<compile_context>
chip_gen: v5e
topology: v5e:2x2
jax: 0.10.0
libtpu: 0.0.40
codegen_flags: <defaults>
</compile_context>

<pallas_src>
import functools

import jax
import jax.numpy as jnp
from jax.experimental import pallas as pl
from jax.experimental.pallas import tpu as pltpu


def _round_up(x, m):
    return (x + m - 1) // m * m


def schema_pred_kernel(logits_ref, sub_ref, out_ref):
    logits = logits_ref[...]                              # (N, bt) f32, batch on lanes
    sub = sub_ref[...]                                    # (N, bt) f32 in {0, 1}

    # attention *= subgraph ; masked_fill(attention == 0, -1e9)
    # (kept exactly as the PyTorch reference, including the value==0 corner case)
    att = logits * sub
    att = jnp.where(att == 0.0, jnp.float32(-1e9), att)

    # softmax over events (sublane axis); exact divide for parity with reference
    m = jnp.max(att, axis=0, keepdims=True)               # (1, bt)  XLU sublane reduce
    e = jnp.exp(att - m)                                  # EUP
    soft = e / jnp.sum(e, axis=0, keepdims=True)

    # pred[b] = sum_n soft[n, b] * logits[n, b]   (pooling matmul eliminated)
    out_ref[...] = jnp.sum(soft * logits, axis=0, keepdims=True)   # (1, bt) lane-dense


@functools.partial(jax.jit, static_argnames=("b_tile",))
def schema_pred(context, all_event_embeddings, b_tile=None):
    """context: int [B, 1+N]; all_event_embeddings: float [N, D] -> float32 [B]."""
    B, c = context.shape
    N, D = all_event_embeddings.shape
    assert c == 1 + N, "context must be [B, 1 + n_events]"

    ev = context[:, 0].astype(jnp.int32)                  # (B,)   event indices
    sub = context[:, 1:].astype(jnp.float32)              # (B, N) subgraph indicator
    emb = all_event_embeddings.astype(jnp.float32)        # (N, D)

    # gram computed once at full f32 precision; exact row gather per batch row.
    gram = jnp.dot(emb, emb.T, precision=jax.lax.Precision.HIGHEST)   # (N, N)
    logits = jnp.take(gram, ev, axis=0)                   # (B, N) == node_emb @ emb.T

    # Tile selection: 128-multiples (unmasked lane-dense stores); for large B
    # this yields >=2 tiles so the "parallel" axis feeds v7x's second TensorCore.
    if b_tile is None:
        b_tile = min(2048, _round_up(max(-(-B // 2), 1), 128))
    b_tile = max(128, _round_up(int(b_tile), 128))
    B_pad = _round_up(B, b_tile)
    n_tiles = B_pad // b_tile

    # Layout plumbing (wrapper-side transpose/pad): batch -> lanes. Padded
    # columns are all-masked; their finite softmax output is sliced off below.
    pad = B_pad - B
    logits_t = jnp.pad(logits.T, ((0, 0), (0, pad)))      # (N, B_pad)
    sub_t = jnp.pad(sub.T, ((0, 0), (0, pad)))            # (N, B_pad)

    out = pl.pallas_call(
        schema_pred_kernel,
        out_shape=jax.ShapeDtypeStruct((1, B_pad), jnp.float32),
        grid_spec=pltpu.PrefetchScalarGridSpec(
            num_scalar_prefetch=0,
            grid=(n_tiles,),
            in_specs=[
                pl.BlockSpec((N, b_tile), lambda i: (0, i)),   # logits_T streamed over B
                pl.BlockSpec((N, b_tile), lambda i: (0, i)),   # sub_T    streamed over B
            ],
            out_specs=pl.BlockSpec((1, b_tile), lambda i: (0, i)),
        ),
        compiler_params=pltpu.CompilerParams(
            dimension_semantics=("parallel",),   # megacore / 2-TC split over batch tiles
        ),
    )(logits_t, sub_t)
    return out.reshape(B_pad)[:B]


def reference(context, all_event_embeddings):
    """Pure-JAX replica of the PyTorch forward (att pooling, dot pred_fn)."""
    ev = context[:, 0]
    sub = context[:, 1:].astype(jnp.float32)
    emb = all_event_embeddings.astype(jnp.float32)
    node_emb = emb[ev]
    att = jnp.dot(node_emb, emb.T, precision=jax.lax.Precision.HIGHEST)
    att = att * sub
    att = jnp.where(att == 0.0, -1e9, att)
    att = jax.nn.softmax(att, axis=-1)
    sg = jnp.dot(att, emb, precision=jax.lax.Precision.HIGHEST)
    return jnp.sum(node_emb * sg, axis=1)


if __name__ == "__main__":
    key = jax.random.PRNGKey(0)
    B = 22            # deliberately not a multiple of the tile -> exercises padding
    n_events = 16
    gnn_dim = 32
    n_schema_nodes = 24
    feat_len = 12

    k1, k2, k3, k4 = jax.random.split(key, 4)

    # --- "context_model(schema)[:n_events]" stand-in ---
    # TODO(synk): the original context_model is an arbitrary GNN; replaced by a
    # deterministic linear projection of schema node features.
    schema_feats = jax.random.normal(k1, (n_schema_nodes, feat_len), jnp.float32)
    w_proj = jax.random.normal(k2, (feat_len, gnn_dim), jnp.float32) * 0.1
    all_event_embeddings = (schema_feats @ w_proj)[:n_events]       # (n_events, gnn_dim)

    # --- context input: [B, 1 + n_events] ---
    event_idx = jax.random.randint(k3, (B, 1), 0, n_events, jnp.int32)
    subgraph = jax.random.bernoulli(k4, 0.4, (B, n_events)).astype(jnp.int32)
    context = jnp.concatenate([event_idx, subgraph], axis=1)        # (B, 1+n_events)

    # use_path=False -> pred = pred_context only
    pred = schema_pred(context, all_event_embeddings)
    pred = jax.block_until_ready(pred)

    ref = reference(context, all_event_embeddings)
    assert pred.shape == (B,)
    assert jnp.allclose(pred, ref, atol=1e-3, rtol=1e-3), (pred, ref)

    print("KERNEL_OK")
</pallas_src>

<mosaic_0001>
module attributes {stable_mosaic.version = 11 : i64} {
  func.func @schema_pred_kernel(%arg0: i32, %arg1: memref<16x128xf32, #tpu.memory_space<vmem>>, %arg2: memref<16x128xf32, #tpu.memory_space<vmem>>, %arg3: memref<1x128xf32, #tpu.memory_space<vmem>>) attributes {dimension_semantics = [#tpu.dimension_semantics<parallel>], iteration_bounds = array<i64: 1>, scalar_prefetch = 0 : i64, scratch_operands = 0 : i64, tpu.core_type = #tpu.core_type<tc>, window_params = [{transform_indices = @transform_0, window_bounds = array<i64: 16, 128>}, {transform_indices = @transform_1, window_bounds = array<i64: 16, 128>}, {transform_indices = @transform_2, window_bounds = array<i64: 1, 128>}]} {
    %c0 = arith.constant 0 : index
    %c0_0 = arith.constant 0 : index
    %0 = vector.load %arg1[%c0, %c0_0] : memref<16x128xf32, #tpu.memory_space<vmem>>, vector<16x128xf32>
    %c0_1 = arith.constant 0 : index
    %c0_2 = arith.constant 0 : index
    %1 = vector.load %arg2[%c0_1, %c0_2] : memref<16x128xf32, #tpu.memory_space<vmem>>, vector<16x128xf32>
    %2 = arith.mulf %0, %1 : vector<16x128xf32>
    %cst = arith.constant 0.000000e+00 : f32
    %3 = vector.broadcast %cst : f32 to vector<16x128xf32>
    %4 = arith.cmpf oeq, %2, %3 : vector<16x128xf32>
    %cst_3 = arith.constant -1.000000e+09 : f32
    %5 = vector.broadcast %cst_3 : f32 to vector<16x128xf32>
    %6 = arith.select %4, %5, %2 : vector<16x128xi1>, vector<16x128xf32>
    %cst_4 = arith.constant dense<0xFF800000> : vector<128xf32>
    %7 = vector.multi_reduction <maximumf>, %6, %cst_4 [0] : vector<16x128xf32> to vector<128xf32>
    %8 = vector.shape_cast %7 : vector<128xf32> to vector<1x128xf32>
    %9 = vector.broadcast %8 : vector<1x128xf32> to vector<16x128xf32>
    %10 = arith.subf %6, %9 : vector<16x128xf32>
    %11 = math.exp %10 : vector<16x128xf32>
    %cst_5 = arith.constant dense<0.000000e+00> : vector<128xf32>
    %12 = vector.multi_reduction <add>, %11, %cst_5 [0] : vector<16x128xf32> to vector<128xf32>
    %13 = vector.shape_cast %12 : vector<128xf32> to vector<1x128xf32>
    %14 = vector.broadcast %13 : vector<1x128xf32> to vector<16x128xf32>
    %15 = arith.divf %11, %14 : vector<16x128xf32>
    %16 = arith.mulf %15, %0 : vector<16x128xf32>
    %cst_6 = arith.constant dense<0.000000e+00> : vector<128xf32>
    %17 = vector.multi_reduction <add>, %16, %cst_6 [0] : vector<16x128xf32> to vector<128xf32>
    %18 = vector.shape_cast %17 : vector<128xf32> to vector<1x128xf32>
    %c0_7 = arith.constant 0 : index
    %c0_8 = arith.constant 0 : index
    %19 = vector.load %arg3[%c0_7, %c0_8] : memref<1x128xf32, #tpu.memory_space<vmem>>, vector<1x128xf32>
    tpu.vector_store %arg3[%c0_7, %c0_8], %18 {strides = array<i32>} : memref<1x128xf32, #tpu.memory_space<vmem>>, vector<1x128xf32>,
    return
  }
  func.func @transform_0(%arg0: i32) -> (i32, i32) {
    %c0_i32 = arith.constant 0 : i32
    %c0_i32_0 = arith.constant 0 : i32
    return %c0_i32, %arg0 : i32, i32
  }
  func.func @transform_1(%arg0: i32) -> (i32, i32) {
    %c0_i32 = arith.constant 0 : i32
    %c0_i32_0 = arith.constant 0 : i32
    return %c0_i32, %arg0 : i32, i32
  }
  func.func @transform_2(%arg0: i32) -> (i32, i32) {
    %c0_i32 = arith.constant 0 : i32
    %c0_i32_0 = arith.constant 0 : i32
    return %c0_i32, %arg0 : i32, i32
  }
}

</mosaic_0001>

<bundles_post_ra>
// kernel: schema_pred.1
= control target key start
LH: loop header
LB: loop body
LE: loop exit
PB: predicated region body
PF: predicated region fallthrough
CT: control target
= control target key end

     0   :  { %s107_s0 = inlined_call_operand.vmem [shape: f32[16,128], index: 0, kind: input, shape index: {}]   ;;  %s108_s1 = inlined_call_operand.vmem [shape: f32[16,128], index: 1, kind: input, shape index: {}]   ;;  %s109_s2 = inlined_call_operand.vmem [shape: f32[1,128], index: 2, kind: output, shape index: {}]  }
   0x1   :  { %v11_v0 = vld [vmem:[%s107_s0] sm:$0xff]  ;;  %v12_v1 = vld [vmem:[%s107_s0 + $0x8] sm:$0xff] }
   0x2   :  { %v13_v2 = vld [vmem:[%s108_s1] sm:$0xff]  ;;  %v14_v3 = vld [vmem:[%s108_s1 + $0x8] sm:$0xff] }
   0x3   :  { %v15_v4 = vmul.f32 %v13_v2, %v11_v0  ;;  %v16_v5 = vmul.f32 %v14_v3, %v12_v1 }
   0x5   :  { %vm17_vm0 = vcmp.eq.f32.partialorder %v15_v4, 0.0  ;;  %vm18_vm1 = vcmp.eq.f32.partialorder %v16_v5, 0.0 }
   0x6   :  { %v19_v6 = vsel %vm17_vm0, -1e+09, %v15_v4  ;;  %v20_v7 = vsel %vm18_vm1, -1e+09, %v16_v5 }
   0x7   :  { %v21_v8 = vmax.f32 %v19_v6, %v20_v7 }
   0x9   :  { %v22_v9 = vrot.slane %v21_v8, 4 }
   0xb   :  { %v23_v10 = vmax.f32 %v21_v8, %v22_v9 }
   0xd   :  { %v24_v11 = vrot.slane %v23_v10, 2 }
   0xf   :  { %v25_v12 = vmax.f32 %v23_v10, %v24_v11 }
  0x11   :  { %v26_v13 = vrot.slane %v25_v12, 1 }
  0x13   :  { %v27_v14 = vmax.f32 %v25_v12, %v26_v13 }
  0x15   :  { %v28_v15 = vsub.f32 %v19_v6, %v27_v14  ;;  %v29_v16 = vsub.f32 %v20_v7, %v27_v14 }
  0x17   :  { %v30_v17 = vmul.f32 1.442695, %v28_v15  ;;  %v32_v18 = vmul.f32 1.442695, %v29_v16 }
  0x19   :  { %71 = vpow2.f32 %v30_v17 }
  0x1a   :  { %73 = vpow2.f32 %v32_v18 }
  0x1f   :  { %v72_v19 = vpop.eup %71 }
  0x20   :  { %v74_v20 = vpop.eup %73 }
  0x21   :  { %v34_v21 = vadd.f32 %v74_v20, %v72_v19 }
  0x23   :  { %v35_v22 = vrot.slane %v34_v21, 4 }
  0x25   :  { %v36_v23 = vadd.f32 %v35_v22, %v34_v21 }
  0x27   :  { %v37_v24 = vrot.slane %v36_v23, 2 }
  0x29   :  { %v38_v25 = vadd.f32 %v37_v24, %v36_v23 }
  0x2b   :  { %v39_v26 = vrot.slane %v38_v25, 1 }
  0x2d   :  { %v40_v27 = vadd.f32 %v39_v26, %v38_v25 }
  0x2f   :  { %75 = vrcp.f32 %v40_v27  ;;  %v52_v30 = vand.u32 2147483648, %v40_v27  ;;  %vm46_vm2 = vweird.f32 %v40_v27  ;;  %v50_v32 = vand.u32 2147483647, %v40_v27 }
  0x31   :  { %v53_v34 = vor.u32 1.1754944e-38, %v52_v30  ;;  %vm51_vm5 = vcmp.eq.f32.partialorder %v50_v32, 8.507059e+37 }
  0x35   :  { %v76_v28 = vpop.eup %75 }
  0x36   :  { %v42_v29 = vmul.f32 %v76_v28, %v40_v27  ;;  %vm47_vm3 = vweird.f32 %v76_v28 }
  0x37   :  { %vm48_vm4 = vmor %vm46_vm2, %vm47_vm3 }
  0x38   :  { %v43_v31 = vsub.f32 1.0, %v42_v29 }
  0x3a   :  { %v44_v33 = vmul.f32 %v76_v28, %v43_v31 }
  0x3c   :  { %v45_v35 = vadd.f32 %v76_v28, %v44_v33 }
  0x3e   :  { %v49_v36 = vsel %vm48_vm4, %v76_v28, %v45_v35 }
  0x3f   :  { %v54_v37 = vsel %vm51_vm5, %v53_v34, %v49_v36 }
  0x40   :  { %v55_v38 = vmul.f32 %v72_v19, %v54_v37  ;;  %v56_v39 = vmul.f32 %v74_v20, %v54_v37 }
  0x42   :  { %v57_v40 = vmul.f32 %v55_v38, %v11_v0  ;;  %v58_v41 = vmul.f32 %v56_v39, %v12_v1 }
  0x44   :  { %v59_v42 = vadd.f32 %v58_v41, %v57_v40 }
  0x46   :  { %v60_v43 = vrot.slane %v59_v42, 4 }
  0x48   :  { %v61_v44 = vadd.f32 %v60_v43, %v59_v42 }
  0x4a   :  { %v62_v45 = vrot.slane %v61_v44, 2 }
  0x4c   :  { %v63_v46 = vadd.f32 %v62_v45, %v61_v44 }
  0x4e   :  { %v64_v47 = vrot.slane %v63_v46, 1 }
  0x50   :  { %v65_v48 = vadd.f32 %v64_v47, %v63_v46 }
  0x52   :  { %66 = vst [vmem:[%s109_s2] sm:$0x1] %v65_v48 }

</bundles_post_ra>
